<compile_context>
chip_gen: v7x
topology: tpu7x:2x2x1
jax: 0.10.0
libtpu: 0.0.40
codegen_flags: <defaults>
</compile_context>

<pallas_src>
import functools

import jax
import jax.numpy as jnp
from jax import lax
from jax.experimental import pallas as pl
from jax.experimental.pallas import tpu as pltpu


_H_CHUNK = 1024  # lanes of hidden processed per VPU-dot step (keeps live vregs small at big H)


def _reranker_kernel(pred_ref, hidden_ref, wcol_ref,
                     scores_ref, loss_ref,
                     hsel_ref, copy_sems,
                     *, group_size, train_batch_size, margin):
    B, S, H = hidden_ref.shape

    # 1) Gather hidden[i, pred[i], :] straight from HBM into a (B, H) VMEM scratch.
    #    Only B*H elements ever move (never the full [B, S, H] tensor).  B is small and
    #    static, so the DMA issue loop is unrolled and all copies are in flight before
    #    we wait on any of them (latencies overlap).
    copies = []
    for i in range(B):
        cp = pltpu.make_async_copy(
            hidden_ref.at[i, pl.ds(pred_ref[i], 1), :],   # (1, H) row in HBM
            hsel_ref.at[pl.ds(i, 1), :],                  # (1, H) row in VMEM
            copy_sems.at[i])
        cp.start()
        copies.append(cp)
    for cp in copies:
        cp.wait()

    # 2) LM head restricted to the single 'Yes' column: chunked VPU dot against the
    #    lane-major (1, H) weight column.  f32 accumulation regardless of input dtype
    #    (v5e's VPU has no bf16); no MXU dependency, no [H,128] weight block DMA.
    acc = jnp.zeros((B, 1), dtype=jnp.float32)
    for start in range(0, H, _H_CHUNK):
        size = min(_H_CHUNK, H - start)
        h_chunk = hsel_ref[:, start:start + size].astype(jnp.float32)   # (B, size)
        w_chunk = wcol_ref[:, start:start + size].astype(jnp.float32)   # (1, size)
        acc = acc + jnp.sum(h_chunk * w_chunk, axis=-1, keepdims=True)
    scores = acc                                                         # (B, 1) f32
    scores_ref[...] = scores

    # 3) Listwise margin (hinge) loss.
    #    grouped = scores.reshape(TB, G); d = grouped[:, :-1] - grouped[:, 1:]
    #    Consecutive flat pairs that do not cross a group boundary are exactly the
    #    within-group pairs -> mask by (row % group_size != group_size - 1).
    diff = scores[:-1, :] - scores[1:, :]                  # (B-1, 1)
    rows = lax.broadcasted_iota(jnp.int32, (B - 1, 1), 0)
    in_group = (rows % group_size) != (group_size - 1)
    hinge = jnp.maximum(jnp.float32(margin) - diff, 0.0)
    loss_ref[0] = jnp.sum(jnp.where(in_group, hinge, 0.0)) / jnp.float32(train_batch_size)


def listwise_reranker_forward(hidden, labels, lm_head_w, yes_loc,
                              train_batch_size, margin=1.0):
    """Returns (loss, scores) exactly like RerankerOutput(loss=..., scores=...)."""
    B, S, H = hidden.shape
    assert B % train_batch_size == 0
    group_size = B // train_batch_size
    assert group_size >= 2, "listwise hinge loss needs >= 2 sequences per group"

    # Glue: predict_indices = argmax(labels, dim=1) - 1.  The mod-S reproduces PyTorch's
    # negative indexing (argmax==0 -> index -1 -> last position) and keeps the in-kernel
    # HBM gather in bounds (TPU DMA OOB reads are silent).  Do NOT change this to a clamp.
    pred = (jnp.argmax(labels, axis=1).astype(jnp.int32) - 1) % S

    # Single 'Yes' column of the LM head, lane-major (1, H), f32.  Only H*4 bytes of weight
    # ever reach the kernel.  In a real training step this slice should be hoisted out of the
    # per-step function so it is not re-materialized each call (it is negligible either way).
    w_col = lm_head_w[:, yes_loc].astype(jnp.float32).reshape(1, H)

    kernel = functools.partial(_reranker_kernel,
                               group_size=group_size,
                               train_batch_size=train_batch_size,
                               margin=float(margin))

    scores, loss = pl.pallas_call(
        kernel,
        out_shape=(jax.ShapeDtypeStruct((B, 1), jnp.float32),
                   jax.ShapeDtypeStruct((1,), jnp.float32)),
        in_specs=[
            pl.BlockSpec(memory_space=pltpu.MemorySpace.SMEM),   # predict indices [B]
            pl.BlockSpec(memory_space=pl.ANY),                   # hidden [B,S,H] stays in HBM
            pl.BlockSpec(memory_space=pltpu.MemorySpace.VMEM),   # 'Yes' weight column [1,H]
        ],
        out_specs=(pl.BlockSpec(memory_space=pltpu.MemorySpace.VMEM),   # scores (B,1)
                   pl.BlockSpec(memory_space=pltpu.MemorySpace.SMEM)),  # loss scalar
        scratch_shapes=[
            pltpu.VMEM((B, H), hidden.dtype),        # gathered rows, same dtype as hidden
            pltpu.SemaphoreType.DMA((B,)),           # one DMA sem per gathered row
        ],
        compiler_params=pltpu.CompilerParams(vmem_limit_bytes=4 * 1024 * 1024),
    )(pred, hidden, w_col)

    return loss[0], scores[:, 0]


if __name__ == "__main__":
    key = jax.random.PRNGKey(0)
    TB, G = 2, 4                    # train_batch_size, listwise group size
    B = TB * G                      # total sequences in the "pair" batch
    S, H, V = 8, 128, 256           # seq len, hidden size, vocab size
    yes_loc = 7                     # token id of 'Yes'
    margin = 1.0

    k1, k2, k3 = jax.random.split(key, 3)
    hidden = jax.random.normal(k1, (B, S, H), dtype=jnp.float32)
    lm_head_w = 0.02 * jax.random.normal(k2, (H, V), dtype=jnp.float32)
    labels = jax.random.randint(k3, (B, S), 0, 50, dtype=jnp.int32)
    labels = labels.at[:, 0].set(-100)   # HF-style ignored prefix -> predict index >= 0

    loss, scores = listwise_reranker_forward(hidden, labels, lm_head_w, yes_loc,
                                             train_batch_size=TB, margin=margin)
    jax.block_until_ready((loss, scores))

    # Pure-JAX reference of the PyTorch forward (training branch).
    pred = jnp.argmax(labels, axis=1) - 1
    full_logits = jnp.einsum('bsh,hv->bsv', hidden, lm_head_w)
    sel = full_logits[jnp.arange(B), pred, :]
    scores_ref = sel[:, yes_loc]
    grouped = scores_ref.reshape(TB, G)
    d = grouped[:, :-1] - grouped[:, 1:]
    loss_ref = jnp.maximum(margin - d, 0.0).sum(axis=1).mean()

    assert jnp.allclose(scores, scores_ref, atol=1e-4, rtol=1e-4), (scores, scores_ref)
    assert jnp.allclose(loss, loss_ref, atol=1e-4, rtol=1e-4), (loss, loss_ref)
    print("KERNEL_OK")
</pallas_src>

<mosaic_0001>
module attributes {stable_mosaic.version = 11 : i64} {
  func.func @_reranker_kernel(%arg0: memref<8xi32, #tpu.memory_space<smem>>, %arg1: memref<8x8x128xf32, #tpu.memory_space<any>>, %arg2: memref<1x128xf32, #tpu.memory_space<vmem>>, %arg3: memref<8x1xf32, #tpu.memory_space<vmem>>, %arg4: memref<1xf32, #tpu.memory_space<smem>>, %arg5: memref<8x128xf32, #tpu.memory_space<vmem>>, %arg6: memref<8x!tpu.dma_semaphore, #tpu.memory_space<semaphore_mem>>) attributes {dimension_semantics = [], scalar_prefetch = 0 : i64, scratch_operands = 2 : i64, tpu.core_type = #tpu.core_type<tc>} {
    %c0 = arith.constant 0 : index
    %0 = memref.load %arg0[%c0] : memref<8xi32, #tpu.memory_space<smem>>
    %c0_i32 = arith.constant 0 : i32
    %c0_i32_0 = arith.constant 0 : i32
    %c0_i32_1 = arith.constant 0 : i32
    %1 = tpu.memref_slice %arg1[%c0_i32, %0, %c0_i32_1] : memref<8x8x128xf32, #tpu.memory_space<any>> -> memref<1x1x128xf32, #tpu.memory_space<any>>
    %2 = tpu.memref_squeeze %1 : memref<1x1x128xf32, #tpu.memory_space<any>> -> memref<1x128xf32, #tpu.memory_space<any>>
    %c0_i32_2 = arith.constant 0 : i32
    %c0_i32_3 = arith.constant 0 : i32
    %3 = tpu.memref_slice %arg5[%c0_i32_2, %c0_i32_3] : memref<8x128xf32, #tpu.memory_space<vmem>> -> memref<1x128xf32, #tpu.memory_space<vmem>>
    %4 = tpu.memref_slice %arg6[%c0_i32_0] : memref<8x!tpu.dma_semaphore, #tpu.memory_space<semaphore_mem>> -> memref<1x!tpu.dma_semaphore, #tpu.memory_space<semaphore_mem>>
    %5 = tpu.memref_squeeze %4 : memref<1x!tpu.dma_semaphore, #tpu.memory_space<semaphore_mem>> -> memref<!tpu.dma_semaphore, #tpu.memory_space<semaphore_mem>>
    tpu.enqueue_dma source(%2 : memref<1x128xf32, #tpu.memory_space<any>>) target(%3 : memref<1x128xf32, #tpu.memory_space<vmem>>) target_semaphore(%5 : memref<!tpu.dma_semaphore, #tpu.memory_space<semaphore_mem>>)
    %c1 = arith.constant 1 : index
    %6 = memref.load %arg0[%c1] : memref<8xi32, #tpu.memory_space<smem>>
    %c1_i32 = arith.constant 1 : i32
    %c1_i32_4 = arith.constant 1 : i32
    %c0_i32_5 = arith.constant 0 : i32
    %7 = tpu.memref_slice %arg1[%c1_i32, %6, %c0_i32_5] : memref<8x8x128xf32, #tpu.memory_space<any>> -> memref<1x1x128xf32, #tpu.memory_space<any>>
    %8 = tpu.memref_squeeze %7 : memref<1x1x128xf32, #tpu.memory_space<any>> -> memref<1x128xf32, #tpu.memory_space<any>>
    %c1_i32_6 = arith.constant 1 : i32
    %c0_i32_7 = arith.constant 0 : i32
    %9 = tpu.memref_slice %arg5[%c1_i32_6, %c0_i32_7] : memref<8x128xf32, #tpu.memory_space<vmem>> -> memref<1x128xf32, #tpu.memory_space<vmem>>
    %10 = tpu.memref_slice %arg6[%c1_i32_4] : memref<8x!tpu.dma_semaphore, #tpu.memory_space<semaphore_mem>> -> memref<1x!tpu.dma_semaphore, #tpu.memory_space<semaphore_mem>>
    %11 = tpu.memref_squeeze %10 : memref<1x!tpu.dma_semaphore, #tpu.memory_space<semaphore_mem>> -> memref<!tpu.dma_semaphore, #tpu.memory_space<semaphore_mem>>
    tpu.enqueue_dma source(%8 : memref<1x128xf32, #tpu.memory_space<any>>) target(%9 : memref<1x128xf32, #tpu.memory_space<vmem>>) target_semaphore(%11 : memref<!tpu.dma_semaphore, #tpu.memory_space<semaphore_mem>>)
    %c2 = arith.constant 2 : index
    %12 = memref.load %arg0[%c2] : memref<8xi32, #tpu.memory_space<smem>>
    %c2_i32 = arith.constant 2 : i32
    %c2_i32_8 = arith.constant 2 : i32
    %c0_i32_9 = arith.constant 0 : i32
    %13 = tpu.memref_slice %arg1[%c2_i32, %12, %c0_i32_9] : memref<8x8x128xf32, #tpu.memory_space<any>> -> memref<1x1x128xf32, #tpu.memory_space<any>>
    %14 = tpu.memref_squeeze %13 : memref<1x1x128xf32, #tpu.memory_space<any>> -> memref<1x128xf32, #tpu.memory_space<any>>
    %c2_i32_10 = arith.constant 2 : i32
    %c0_i32_11 = arith.constant 0 : i32
    %15 = tpu.memref_slice %arg5[%c2_i32_10, %c0_i32_11] : memref<8x128xf32, #tpu.memory_space<vmem>> -> memref<1x128xf32, #tpu.memory_space<vmem>>
    %16 = tpu.memref_slice %arg6[%c2_i32_8] : memref<8x!tpu.dma_semaphore, #tpu.memory_space<semaphore_mem>> -> memref<1x!tpu.dma_semaphore, #tpu.memory_space<semaphore_mem>>
    %17 = tpu.memref_squeeze %16 : memref<1x!tpu.dma_semaphore, #tpu.memory_space<semaphore_mem>> -> memref<!tpu.dma_semaphore, #tpu.memory_space<semaphore_mem>>
    tpu.enqueue_dma source(%14 : memref<1x128xf32, #tpu.memory_space<any>>) target(%15 : memref<1x128xf32, #tpu.memory_space<vmem>>) target_semaphore(%17 : memref<!tpu.dma_semaphore, #tpu.memory_space<semaphore_mem>>)
    %c3 = arith.constant 3 : index
    %18 = memref.load %arg0[%c3] : memref<8xi32, #tpu.memory_space<smem>>
    %c3_i32 = arith.constant 3 : i32
    %c3_i32_12 = arith.constant 3 : i32
    %c0_i32_13 = arith.constant 0 : i32
    %19 = tpu.memref_slice %arg1[%c3_i32, %18, %c0_i32_13] : memref<8x8x128xf32, #tpu.memory_space<any>> -> memref<1x1x128xf32, #tpu.memory_space<any>>
    %20 = tpu.memref_squeeze %19 : memref<1x1x128xf32, #tpu.memory_space<any>> -> memref<1x128xf32, #tpu.memory_space<any>>
    %c3_i32_14 = arith.constant 3 : i32
    %c0_i32_15 = arith.constant 0 : i32
    %21 = tpu.memref_slice %arg5[%c3_i32_14, %c0_i32_15] : memref<8x128xf32, #tpu.memory_space<vmem>> -> memref<1x128xf32, #tpu.memory_space<vmem>>
    %22 = tpu.memref_slice %arg6[%c3_i32_12] : memref<8x!tpu.dma_semaphore, #tpu.memory_space<semaphore_mem>> -> memref<1x!tpu.dma_semaphore, #tpu.memory_space<semaphore_mem>>
    %23 = tpu.memref_squeeze %22 : memref<1x!tpu.dma_semaphore, #tpu.memory_space<semaphore_mem>> -> memref<!tpu.dma_semaphore, #tpu.memory_space<semaphore_mem>>
    tpu.enqueue_dma source(%20 : memref<1x128xf32, #tpu.memory_space<any>>) target(%21 : memref<1x128xf32, #tpu.memory_space<vmem>>) target_semaphore(%23 : memref<!tpu.dma_semaphore, #tpu.memory_space<semaphore_mem>>)
    %c4 = arith.constant 4 : index
    %24 = memref.load %arg0[%c4] : memref<8xi32, #tpu.memory_space<smem>>
    %c4_i32 = arith.constant 4 : i32
    %c4_i32_16 = arith.constant 4 : i32
    %c0_i32_17 = arith.constant 0 : i32
    %25 = tpu.memref_slice %arg1[%c4_i32, %24, %c0_i32_17] : memref<8x8x128xf32, #tpu.memory_space<any>> -> memref<1x1x128xf32, #tpu.memory_space<any>>
    %26 = tpu.memref_squeeze %25 : memref<1x1x128xf32, #tpu.memory_space<any>> -> memref<1x128xf32, #tpu.memory_space<any>>
    %c4_i32_18 = arith.constant 4 : i32
    %c0_i32_19 = arith.constant 0 : i32
    %27 = tpu.memref_slice %arg5[%c4_i32_18, %c0_i32_19] : memref<8x128xf32, #tpu.memory_space<vmem>> -> memref<1x128xf32, #tpu.memory_space<vmem>>
    %28 = tpu.memref_slice %arg6[%c4_i32_16] : memref<8x!tpu.dma_semaphore, #tpu.memory_space<semaphore_mem>> -> memref<1x!tpu.dma_semaphore, #tpu.memory_space<semaphore_mem>>
    %29 = tpu.memref_squeeze %28 : memref<1x!tpu.dma_semaphore, #tpu.memory_space<semaphore_mem>> -> memref<!tpu.dma_semaphore, #tpu.memory_space<semaphore_mem>>
    tpu.enqueue_dma source(%26 : memref<1x128xf32, #tpu.memory_space<any>>) target(%27 : memref<1x128xf32, #tpu.memory_space<vmem>>) target_semaphore(%29 : memref<!tpu.dma_semaphore, #tpu.memory_space<semaphore_mem>>)
    %c5 = arith.constant 5 : index
    %30 = memref.load %arg0[%c5] : memref<8xi32, #tpu.memory_space<smem>>
    %c5_i32 = arith.constant 5 : i32
    %c5_i32_20 = arith.constant 5 : i32
    %c0_i32_21 = arith.constant 0 : i32
    %31 = tpu.memref_slice %arg1[%c5_i32, %30, %c0_i32_21] : memref<8x8x128xf32, #tpu.memory_space<any>> -> memref<1x1x128xf32, #tpu.memory_space<any>>
    %32 = tpu.memref_squeeze %31 : memref<1x1x128xf32, #tpu.memory_space<any>> -> memref<1x128xf32, #tpu.memory_space<any>>
    %c5_i32_22 = arith.constant 5 : i32
    %c0_i32_23 = arith.constant 0 : i32
    %33 = tpu.memref_slice %arg5[%c5_i32_22, %c0_i32_23] : memref<8x128xf32, #tpu.memory_space<vmem>> -> memref<1x128xf32, #tpu.memory_space<vmem>>
    %34 = tpu.memref_slice %arg6[%c5_i32_20] : memref<8x!tpu.dma_semaphore, #tpu.memory_space<semaphore_mem>> -> memref<1x!tpu.dma_semaphore, #tpu.memory_space<semaphore_mem>>
    %35 = tpu.memref_squeeze %34 : memref<1x!tpu.dma_semaphore, #tpu.memory_space<semaphore_mem>> -> memref<!tpu.dma_semaphore, #tpu.memory_space<semaphore_mem>>
    tpu.enqueue_dma source(%32 : memref<1x128xf32, #tpu.memory_space<any>>) target(%33 : memref<1x128xf32, #tpu.memory_space<vmem>>) target_semaphore(%35 : memref<!tpu.dma_semaphore, #tpu.memory_space<semaphore_mem>>)
    %c6 = arith.constant 6 : index
    %36 = memref.load %arg0[%c6] : memref<8xi32, #tpu.memory_space<smem>>
    %c6_i32 = arith.constant 6 : i32
    %c6_i32_24 = arith.constant 6 : i32
    %c0_i32_25 = arith.constant 0 : i32
    %37 = tpu.memref_slice %arg1[%c6_i32, %36, %c0_i32_25] : memref<8x8x128xf32, #tpu.memory_space<any>> -> memref<1x1x128xf32, #tpu.memory_space<any>>
    %38 = tpu.memref_squeeze %37 : memref<1x1x128xf32, #tpu.memory_space<any>> -> memref<1x128xf32, #tpu.memory_space<any>>
    %c6_i32_26 = arith.constant 6 : i32
    %c0_i32_27 = arith.constant 0 : i32
    %39 = tpu.memref_slice %arg5[%c6_i32_26, %c0_i32_27] : memref<8x128xf32, #tpu.memory_space<vmem>> -> memref<1x128xf32, #tpu.memory_space<vmem>>
    %40 = tpu.memref_slice %arg6[%c6_i32_24] : memref<8x!tpu.dma_semaphore, #tpu.memory_space<semaphore_mem>> -> memref<1x!tpu.dma_semaphore, #tpu.memory_space<semaphore_mem>>
    %41 = tpu.memref_squeeze %40 : memref<1x!tpu.dma_semaphore, #tpu.memory_space<semaphore_mem>> -> memref<!tpu.dma_semaphore, #tpu.memory_space<semaphore_mem>>
    tpu.enqueue_dma source(%38 : memref<1x128xf32, #tpu.memory_space<any>>) target(%39 : memref<1x128xf32, #tpu.memory_space<vmem>>) target_semaphore(%41 : memref<!tpu.dma_semaphore, #tpu.memory_space<semaphore_mem>>)
    %c7 = arith.constant 7 : index
    %42 = memref.load %arg0[%c7] : memref<8xi32, #tpu.memory_space<smem>>
    %c7_i32 = arith.constant 7 : i32
    %c7_i32_28 = arith.constant 7 : i32
    %c0_i32_29 = arith.constant 0 : i32
    %43 = tpu.memref_slice %arg1[%c7_i32, %42, %c0_i32_29] : memref<8x8x128xf32, #tpu.memory_space<any>> -> memref<1x1x128xf32, #tpu.memory_space<any>>
    %44 = tpu.memref_squeeze %43 : memref<1x1x128xf32, #tpu.memory_space<any>> -> memref<1x128xf32, #tpu.memory_space<any>>
    %c7_i32_30 = arith.constant 7 : i32
    %c0_i32_31 = arith.constant 0 : i32
    %45 = tpu.memref_slice %arg5[%c7_i32_30, %c0_i32_31] : memref<8x128xf32, #tpu.memory_space<vmem>> -> memref<1x128xf32, #tpu.memory_space<vmem>>
    %46 = tpu.memref_slice %arg6[%c7_i32_28] : memref<8x!tpu.dma_semaphore, #tpu.memory_space<semaphore_mem>> -> memref<1x!tpu.dma_semaphore, #tpu.memory_space<semaphore_mem>>
    %47 = tpu.memref_squeeze %46 : memref<1x!tpu.dma_semaphore, #tpu.memory_space<semaphore_mem>> -> memref<!tpu.dma_semaphore, #tpu.memory_space<semaphore_mem>>
    tpu.enqueue_dma source(%44 : memref<1x128xf32, #tpu.memory_space<any>>) target(%45 : memref<1x128xf32, #tpu.memory_space<vmem>>) target_semaphore(%47 : memref<!tpu.dma_semaphore, #tpu.memory_space<semaphore_mem>>)
    %c0_i32_32 = arith.constant 0 : i32
    %c0_i32_33 = arith.constant 0 : i32
    %c0_i32_34 = arith.constant 0 : i32
    %48 = tpu.memref_slice %arg1[%c0_i32_32, %0, %c0_i32_34] : memref<8x8x128xf32, #tpu.memory_space<any>> -> memref<1x1x128xf32, #tpu.memory_space<any>>
    %49 = tpu.memref_squeeze %48 : memref<1x1x128xf32, #tpu.memory_space<any>> -> memref<1x128xf32, #tpu.memory_space<any>>
    %c0_i32_35 = arith.constant 0 : i32
    %c0_i32_36 = arith.constant 0 : i32
    %50 = tpu.memref_slice %arg5[%c0_i32_35, %c0_i32_36] : memref<8x128xf32, #tpu.memory_space<vmem>> -> memref<1x128xf32, #tpu.memory_space<vmem>>
    %51 = tpu.memref_slice %arg6[%c0_i32_33] : memref<8x!tpu.dma_semaphore, #tpu.memory_space<semaphore_mem>> -> memref<1x!tpu.dma_semaphore, #tpu.memory_space<semaphore_mem>>
    %52 = tpu.memref_squeeze %51 : memref<1x!tpu.dma_semaphore, #tpu.memory_space<semaphore_mem>> -> memref<!tpu.dma_semaphore, #tpu.memory_space<semaphore_mem>>
    tpu.wait_dma2 semaphore(%52 : memref<!tpu.dma_semaphore, #tpu.memory_space<semaphore_mem>>) src(%49 : memref<1x128xf32, #tpu.memory_space<any>>) dst(%50 : memref<1x128xf32, #tpu.memory_space<vmem>>)
    %c1_i32_37 = arith.constant 1 : i32
    %c1_i32_38 = arith.constant 1 : i32
    %c0_i32_39 = arith.constant 0 : i32
    %53 = tpu.memref_slice %arg1[%c1_i32_37, %6, %c0_i32_39] : memref<8x8x128xf32, #tpu.memory_space<any>> -> memref<1x1x128xf32, #tpu.memory_space<any>>
    %54 = tpu.memref_squeeze %53 : memref<1x1x128xf32, #tpu.memory_space<any>> -> memref<1x128xf32, #tpu.memory_space<any>>
    %c1_i32_40 = arith.constant 1 : i32
    %c0_i32_41 = arith.constant 0 : i32
    %55 = tpu.memref_slice %arg5[%c1_i32_40, %c0_i32_41] : memref<8x128xf32, #tpu.memory_space<vmem>> -> memref<1x128xf32, #tpu.memory_space<vmem>>
    %56 = tpu.memref_slice %arg6[%c1_i32_38] : memref<8x!tpu.dma_semaphore, #tpu.memory_space<semaphore_mem>> -> memref<1x!tpu.dma_semaphore, #tpu.memory_space<semaphore_mem>>
    %57 = tpu.memref_squeeze %56 : memref<1x!tpu.dma_semaphore, #tpu.memory_space<semaphore_mem>> -> memref<!tpu.dma_semaphore, #tpu.memory_space<semaphore_mem>>
    tpu.wait_dma2 semaphore(%57 : memref<!tpu.dma_semaphore, #tpu.memory_space<semaphore_mem>>) src(%54 : memref<1x128xf32, #tpu.memory_space<any>>) dst(%55 : memref<1x128xf32, #tpu.memory_space<vmem>>)
    %c2_i32_42 = arith.constant 2 : i32
    %c2_i32_43 = arith.constant 2 : i32
    %c0_i32_44 = arith.constant 0 : i32
    %58 = tpu.memref_slice %arg1[%c2_i32_42, %12, %c0_i32_44] : memref<8x8x128xf32, #tpu.memory_space<any>> -> memref<1x1x128xf32, #tpu.memory_space<any>>
    %59 = tpu.memref_squeeze %58 : memref<1x1x128xf32, #tpu.memory_space<any>> -> memref<1x128xf32, #tpu.memory_space<any>>
    %c2_i32_45 = arith.constant 2 : i32
    %c0_i32_46 = arith.constant 0 : i32
    %60 = tpu.memref_slice %arg5[%c2_i32_45, %c0_i32_46] : memref<8x128xf32, #tpu.memory_space<vmem>> -> memref<1x128xf32, #tpu.memory_space<vmem>>
    %61 = tpu.memref_slice %arg6[%c2_i32_43] : memref<8x!tpu.dma_semaphore, #tpu.memory_space<semaphore_mem>> -> memref<1x!tpu.dma_semaphore, #tpu.memory_space<semaphore_mem>>
    %62 = tpu.memref_squeeze %61 : memref<1x!tpu.dma_semaphore, #tpu.memory_space<semaphore_mem>> -> memref<!tpu.dma_semaphore, #tpu.memory_space<semaphore_mem>>
    tpu.wait_dma2 semaphore(%62 : memref<!tpu.dma_semaphore, #tpu.memory_space<semaphore_mem>>) src(%59 : memref<1x128xf32, #tpu.memory_space<any>>) dst(%60 : memref<1x128xf32, #tpu.memory_space<vmem>>)
    %c3_i32_47 = arith.constant 3 : i32
    %c3_i32_48 = arith.constant 3 : i32
    %c0_i32_49 = arith.constant 0 : i32
    %63 = tpu.memref_slice %arg1[%c3_i32_47, %18, %c0_i32_49] : memref<8x8x128xf32, #tpu.memory_space<any>> -> memref<1x1x128xf32, #tpu.memory_space<any>>
    %64 = tpu.memref_squeeze %63 : memref<1x1x128xf32, #tpu.memory_space<any>> -> memref<1x128xf32, #tpu.memory_space<any>>
    %c3_i32_50 = arith.constant 3 : i32
    %c0_i32_51 = arith.constant 0 : i32
    %65 = tpu.memref_slice %arg5[%c3_i32_50, %c0_i32_51] : memref<8x128xf32, #tpu.memory_space<vmem>> -> memref<1x128xf32, #tpu.memory_space<vmem>>
    %66 = tpu.memref_slice %arg6[%c3_i32_48] : memref<8x!tpu.dma_semaphore, #tpu.memory_space<semaphore_mem>> -> memref<1x!tpu.dma_semaphore, #tpu.memory_space<semaphore_mem>>
    %67 = tpu.memref_squeeze %66 : memref<1x!tpu.dma_semaphore, #tpu.memory_space<semaphore_mem>> -> memref<!tpu.dma_semaphore, #tpu.memory_space<semaphore_mem>>
    tpu.wait_dma2 semaphore(%67 : memref<!tpu.dma_semaphore, #tpu.memory_space<semaphore_mem>>) src(%64 : memref<1x128xf32, #tpu.memory_space<any>>) dst(%65 : memref<1x128xf32, #tpu.memory_space<vmem>>)
    %c4_i32_52 = arith.constant 4 : i32
    %c4_i32_53 = arith.constant 4 : i32
    %c0_i32_54 = arith.constant 0 : i32
    %68 = tpu.memref_slice %arg1[%c4_i32_52, %24, %c0_i32_54] : memref<8x8x128xf32, #tpu.memory_space<any>> -> memref<1x1x128xf32, #tpu.memory_space<any>>
    %69 = tpu.memref_squeeze %68 : memref<1x1x128xf32, #tpu.memory_space<any>> -> memref<1x128xf32, #tpu.memory_space<any>>
    %c4_i32_55 = arith.constant 4 : i32
    %c0_i32_56 = arith.constant 0 : i32
    %70 = tpu.memref_slice %arg5[%c4_i32_55, %c0_i32_56] : memref<8x128xf32, #tpu.memory_space<vmem>> -> memref<1x128xf32, #tpu.memory_space<vmem>>
    %71 = tpu.memref_slice %arg6[%c4_i32_53] : memref<8x!tpu.dma_semaphore, #tpu.memory_space<semaphore_mem>> -> memref<1x!tpu.dma_semaphore, #tpu.memory_space<semaphore_mem>>
    %72 = tpu.memref_squeeze %71 : memref<1x!tpu.dma_semaphore, #tpu.memory_space<semaphore_mem>> -> memref<!tpu.dma_semaphore, #tpu.memory_space<semaphore_mem>>
    tpu.wait_dma2 semaphore(%72 : memref<!tpu.dma_semaphore, #tpu.memory_space<semaphore_mem>>) src(%69 : memref<1x128xf32, #tpu.memory_space<any>>) dst(%70 : memref<1x128xf32, #tpu.memory_space<vmem>>)
    %c5_i32_57 = arith.constant 5 : i32
    %c5_i32_58 = arith.constant 5 : i32
    %c0_i32_59 = arith.constant 0 : i32
    %73 = tpu.memref_slice %arg1[%c5_i32_57, %30, %c0_i32_59] : memref<8x8x128xf32, #tpu.memory_space<any>> -> memref<1x1x128xf32, #tpu.memory_space<any>>
    %74 = tpu.memref_squeeze %73 : memref<1x1x128xf32, #tpu.memory_space<any>> -> memref<1x128xf32, #tpu.memory_space<any>>
    %c5_i32_60 = arith.constant 5 : i32
    %c0_i32_61 = arith.constant 0 : i32
    %75 = tpu.memref_slice %arg5[%c5_i32_60, %c0_i32_61] : memref<8x128xf32, #tpu.memory_space<vmem>> -> memref<1x128xf32, #tpu.memory_space<vmem>>
    %76 = tpu.memref_slice %arg6[%c5_i32_58] : memref<8x!tpu.dma_semaphore, #tpu.memory_space<semaphore_mem>> -> memref<1x!tpu.dma_semaphore, #tpu.memory_space<semaphore_mem>>
    %77 = tpu.memref_squeeze %76 : memref<1x!tpu.dma_semaphore, #tpu.memory_space<semaphore_mem>> -> memref<!tpu.dma_semaphore, #tpu.memory_space<semaphore_mem>>
    tpu.wait_dma2 semaphore(%77 : memref<!tpu.dma_semaphore, #tpu.memory_space<semaphore_mem>>) src(%74 : memref<1x128xf32, #tpu.memory_space<any>>) dst(%75 : memref<1x128xf32, #tpu.memory_space<vmem>>)
    %c6_i32_62 = arith.constant 6 : i32
    %c6_i32_63 = arith.constant 6 : i32
    %c0_i32_64 = arith.constant 0 : i32
    %78 = tpu.memref_slice %arg1[%c6_i32_62, %36, %c0_i32_64] : memref<8x8x128xf32, #tpu.memory_space<any>> -> memref<1x1x128xf32, #tpu.memory_space<any>>
    %79 = tpu.memref_squeeze %78 : memref<1x1x128xf32, #tpu.memory_space<any>> -> memref<1x128xf32, #tpu.memory_space<any>>
    %c6_i32_65 = arith.constant 6 : i32
    %c0_i32_66 = arith.constant 0 : i32
    %80 = tpu.memref_slice %arg5[%c6_i32_65, %c0_i32_66] : memref<8x128xf32, #tpu.memory_space<vmem>> -> memref<1x128xf32, #tpu.memory_space<vmem>>
    %81 = tpu.memref_slice %arg6[%c6_i32_63] : memref<8x!tpu.dma_semaphore, #tpu.memory_space<semaphore_mem>> -> memref<1x!tpu.dma_semaphore, #tpu.memory_space<semaphore_mem>>
    %82 = tpu.memref_squeeze %81 : memref<1x!tpu.dma_semaphore, #tpu.memory_space<semaphore_mem>> -> memref<!tpu.dma_semaphore, #tpu.memory_space<semaphore_mem>>
    tpu.wait_dma2 semaphore(%82 : memref<!tpu.dma_semaphore, #tpu.memory_space<semaphore_mem>>) src(%79 : memref<1x128xf32, #tpu.memory_space<any>>) dst(%80 : memref<1x128xf32, #tpu.memory_space<vmem>>)
    %c7_i32_67 = arith.constant 7 : i32
    %c7_i32_68 = arith.constant 7 : i32
    %c0_i32_69 = arith.constant 0 : i32
    %83 = tpu.memref_slice %arg1[%c7_i32_67, %42, %c0_i32_69] : memref<8x8x128xf32, #tpu.memory_space<any>> -> memref<1x1x128xf32, #tpu.memory_space<any>>
    %84 = tpu.memref_squeeze %83 : memref<1x1x128xf32, #tpu.memory_space<any>> -> memref<1x128xf32, #tpu.memory_space<any>>
    %c7_i32_70 = arith.constant 7 : i32
    %c0_i32_71 = arith.constant 0 : i32
    %85 = tpu.memref_slice %arg5[%c7_i32_70, %c0_i32_71] : memref<8x128xf32, #tpu.memory_space<vmem>> -> memref<1x128xf32, #tpu.memory_space<vmem>>
    %86 = tpu.memref_slice %arg6[%c7_i32_68] : memref<8x!tpu.dma_semaphore, #tpu.memory_space<semaphore_mem>> -> memref<1x!tpu.dma_semaphore, #tpu.memory_space<semaphore_mem>>
    %87 = tpu.memref_squeeze %86 : memref<1x!tpu.dma_semaphore, #tpu.memory_space<semaphore_mem>> -> memref<!tpu.dma_semaphore, #tpu.memory_space<semaphore_mem>>
    tpu.wait_dma2 semaphore(%87 : memref<!tpu.dma_semaphore, #tpu.memory_space<semaphore_mem>>) src(%84 : memref<1x128xf32, #tpu.memory_space<any>>) dst(%85 : memref<1x128xf32, #tpu.memory_space<vmem>>)
    %cst = arith.constant 0.000000e+00 : f32
    %88 = vector.broadcast %cst : f32 to vector<8x1xf32>
    %c0_72 = arith.constant 0 : index
    %c0_73 = arith.constant 0 : index
    %89 = vector.load %arg5[%c0_72, %c0_73] : memref<8x128xf32, #tpu.memory_space<vmem>>, vector<8x128xf32>
    %c0_74 = arith.constant 0 : index
    %c0_75 = arith.constant 0 : index
    %90 = vector.load %arg2[%c0_74, %c0_75] : memref<1x128xf32, #tpu.memory_space<vmem>>, vector<1x128xf32>
    %91 = vector.broadcast %90 : vector<1x128xf32> to vector<8x128xf32>
    %92 = arith.mulf %89, %91 : vector<8x128xf32>
    %cst_76 = arith.constant dense<0.000000e+00> : vector<8xf32>
    %93 = vector.multi_reduction <add>, %92, %cst_76 [1] : vector<8x128xf32> to vector<8xf32>
    %94 = vector.shape_cast %93 : vector<8xf32> to vector<8x1xf32>
    %95 = arith.addf %88, %94 : vector<8x1xf32>
    %c0_77 = arith.constant 0 : index
    %c0_78 = arith.constant 0 : index
    %96 = vector.load %arg3[%c0_77, %c0_78] : memref<8x1xf32, #tpu.memory_space<vmem>>, vector<8x1xf32>
    tpu.vector_store %arg3[%c0_77, %c0_78], %95 {strides = array<i32>} : memref<8x1xf32, #tpu.memory_space<vmem>>, vector<8x1xf32>,
    %97 = vector.extract_strided_slice %95 {offsets = [0, 0], sizes = [7, 1], strides = [1, 1]} : vector<8x1xf32> to vector<7x1xf32>
    %98 = vector.extract_strided_slice %95 {offsets = [1, 0], sizes = [7, 1], strides = [1, 1]} : vector<8x1xf32> to vector<7x1xf32>
    %99 = arith.subf %97, %98 : vector<7x1xf32>
    %100 = tpu.iota {dimensions = array<i32: 0>} : vector<7x1xi32>
    %c4_i32_79 = arith.constant 4 : i32
    %c0_i32_80 = arith.constant 0 : i32
    %101 = arith.cmpi eq, %c4_i32_79, %c0_i32_80 : i32
    %c1_i32_81 = arith.constant 1 : i32
    %102 = arith.select %101, %c1_i32_81, %c4_i32_79 : i32
    %103 = vector.broadcast %102 : i32 to vector<7x1xi32>
    %104 = arith.remsi %100, %103 : vector<7x1xi32>
    %c0_i32_82 = arith.constant 0 : i32
    %105 = vector.broadcast %c0_i32_82 : i32 to vector<7x1xi32>
    %106 = arith.cmpi ne, %104, %105 : vector<7x1xi32>
    %c0_i32_83 = arith.constant 0 : i32
    %107 = vector.broadcast %c0_i32_83 : i32 to vector<7x1xi32>
    %108 = arith.cmpi slt, %104, %107 : vector<7x1xi32>
    %c0_i32_84 = arith.constant 0 : i32
    %109 = arith.cmpi slt, %102, %c0_i32_84 : i32
    %110 = vector.broadcast %109 : i1 to vector<7x1xi1>
    %111 = vector.broadcast %110 : vector<7x1xi1> to vector<7x1xi1>
    %112 = arith.xori %108, %111 : vector<7x1xi1>
    %113 = arith.andi %112, %106 : vector<7x1xi1>
    %114 = vector.broadcast %102 : i32 to vector<7x1xi32>
    %115 = arith.addi %104, %114 : vector<7x1xi32>
    %116 = arith.select %113, %115, %104 : vector<7x1xi1>, vector<7x1xi32>
    %c3_i32_85 = arith.constant 3 : i32
    %117 = vector.broadcast %c3_i32_85 : i32 to vector<7x1xi32>
    %118 = arith.cmpi ne, %116, %117 : vector<7x1xi32>
    %cst_86 = arith.constant 1.000000e+00 : f32
    %119 = vector.broadcast %cst_86 : f32 to vector<7x1xf32>
    %120 = arith.subf %119, %99 : vector<7x1xf32>
    %cst_87 = arith.constant 0.000000e+00 : f32
    %121 = vector.broadcast %cst_87 : f32 to vector<7x1xf32>
    %122 = arith.maximumf %120, %121 : vector<7x1xf32>
    %cst_88 = arith.constant 0.000000e+00 : f32
    %123 = vector.broadcast %cst_88 : f32 to vector<7x1xf32>
    %124 = arith.select %118, %122, %123 : vector<7x1xi1>, vector<7x1xf32>
    %125 = vector.shape_cast %124 : vector<7x1xf32> to vector<1x7x1xf32>
    %cst_89 = arith.constant dense<0.000000e+00> : vector<1xf32>
    %126 = vector.multi_reduction <add>, %125, %cst_89 [1, 2] : vector<1x7x1xf32> to vector<1xf32>
    %127 = vector.shape_cast %126 : vector<1xf32> to vector<1x1x1xf32>
    %128 = vector.extract %127[0, 0, 0] : f32 from vector<1x1x1xf32>
    %cst_90 = arith.constant 2.000000e+00 : f32
    %129 = arith.divf %128, %cst_90 : f32
    %c0_91 = arith.constant 0 : index
    %130 = memref.load %arg4[%c0_91] : memref<1xf32, #tpu.memory_space<smem>>
    memref.store %129, %arg4[%c0_91] : memref<1xf32, #tpu.memory_space<smem>>
    return
  }
}

</mosaic_0001>

<bundles_post_ra>
// kernel: tpu_custom_call.1
= control target key start
LH: loop header
LB: loop body
LE: loop exit
PB: predicated region body
PF: predicated region fallthrough
CT: control target
= control target key end

     0   :  { %10 = vsyncpa [#allocation5], 0  ;;  %s789_s0 = inlined_call_operand.hbm [shape: s32[8], index: 0, kind: input, shape index: {}]   ;;  %s790_s1 = inlined_call_operand.hbm [shape: f32[8,8,128], index: 1, kind: input, shape index: {}]   ;;  %s791_s2 = inlined_call_operand.vmem [shape: f32[1,128], index: 2, kind: input, shape index: {}]   ;;  %s792_s3 = inlined_call_operand.vmem [shape: f32[8,1], index: 3, kind: output, shape index: {0}]   ;;  %s793_s4 = inlined_call_operand.hbm [shape: f32[1], index: 4, kind: output, shape index: {1}]  }
   0x1   :  { %11 = vsyncpa [#allocation6], 0  ;;  %s360_s17 = scalar_lea.hbm %s789_s0, 16 }
   0x2   :  { %p361_p0 = scmp.ne.s32.totalorder %s789_s0, %s360_s17  ;;  %p364_p1 = scmp.lt.u32.totalorder %s360_s17, %s789_s0 }
   0x4   :  { %p366_p2 = pnand %p364_p1, %p361_p0 }
   0x6   :  { %369 = shalt.err (!%p366_p2)
}
   0x7   :  { %s599_s22 = smov [#allocation4]  }
   0x8   :  { %19 = dma.hbm_to_smem %s789_s0, 16, %s599_s22, [#allocation5]  }
   0x9   :  { %579 = dma.done.wait [#allocation5], 16  }
   0xa   :  { %580 = vsyncadd [#allocation5], 4294967280 }
   0xb   :  { %25 = sfence }
   0xc   :  { %s26_s25 = sld [smem:[#allocation4]]  ;;  %s600_s26 = smov [#allocation2]  }
   0xd   :  { %s36_s27 = sshll.u32 %s600_s26, 4  ;;  %s646_s28 = sld [smem:[#allocation4 + $0x1]]  ;;  %s648_s27 = int_to_ptr.vmem [resolvable:$true] %s36_s27 }
   0xe   :  { %s601_s29 = smov [#allocation2 + $0x1]   ;;  %s650_s5 = sld [smem:[#allocation4 + $0x2]] }
   0xf   :  { %s53_s30 = sshll.u32 %s601_s29, 4  ;;  %s602_s6 = smov [#allocation2 + $0x2]   ;;  %s652_s30 = int_to_ptr.vmem [resolvable:$true] %s53_s30 }
  0x10   :  { %s70_s7 = sshll.u32 %s602_s6, 4  ;;  %s654_s0 = sld [smem:[#allocation4 + $0x3]]  ;;  %s656_s7 = int_to_ptr.vmem [resolvable:$true] %s70_s7 }
  0x11   :  { %s665_s16 = scalar_lea.hbm %s790_s1, 1024 }
  0x12   :  { %s324_s8 = sshll.u32 %s26_s25, 4 }
  0x13   :  { %s28_s11 = scalar_lea.hbm %s790_s1, %s324_s8  ;;  %s326_s12 = sshll.u32 %s646_s28, 4 }
  0x14   :  { %s370_s13 = scalar_lea.hbm %s28_s11, 16  ;;  %p373_p4 = scmp.lt.u32.totalorder %s28_s11, %s790_s1 }
  0x15   :  { %p371_p3 = scmp.ne.s32.totalorder %s28_s11, %s370_s13  ;;  %p374_p5 = scmp.lt.u32.totalorder %s665_s16, %s370_s13 }
  0x16   :  { %p376_p7 = scmp.lt.u32.totalorder %s370_s13, %s28_s11 }
  0x17   :  { %p375_p6 = por %p374_p5, %p373_p4 }
  0x19   :  { %p377_p8 = por %p376_p7, %p375_p6 }
  0x1b   :  { %p378_p9 = pnand %p377_p8, %p371_p3 }
  0x1d   :  { %381 = shalt.err (!%p378_p9)  }
  0x1e   :  { %s382_s19 = scalar_lea.vmem %s648_s27, 16  ;;  %s674_s20 = scalar_lea.vmem %s648_s27, 128 }
  0x1f   :  { %p383_p10 = scmp.ne.s32.totalorder %s648_s27, %s382_s19  ;;  %p387_p11 = scmp.lt.s32.totalorder %s648_s27, %s648_s27 }
  0x20   :  { %p388_p12 = scmp.lt.s32.totalorder %s674_s20, %s382_s19 }
  0x22   :  { %p389_p13 = por %p388_p12, %p387_p11 }
  0x24   :  { %p390_p0 = pnand %p389_p13, %p383_p10 }
  0x26   :  { %393 = shalt.err (!%p390_p0)  }
  0x27   :  { %39 = dma.hbm_to_vmem [thread:$0]  %s28_s11, 16, %s648_s27, [#allocation3] }
  0x28   :  { %s304_s23 = scalar_lea.hbm %s790_s1, %s326_s12  ;;  %s328_s24 = sshll.u32 %s650_s5, 4 }
  0x29   :  { %s305_s25 = scalar_lea.hbm %s304_s23, 128  ;;  %s307_s29 = scalar_lea.hbm %s790_s1, %s328_s24 }
  0x2a   :  { %s418_s6 = scalar_lea.hbm %s304_s23, 144  ;;  %p397_p2 = scmp.lt.u32.totalorder %s305_s25, %s790_s1 }
  0x2b   :  { %p395_p1 = scmp.ne.s32.totalorder %s305_s25, %s418_s6  ;;  %p398_p3 = scmp.lt.u32.totalorder %s665_s16, %s418_s6 }
  0x2c   :  { %p400_p5 = scmp.lt.u32.totalorder %s418_s6, %s305_s25 }
  0x2d   :  { %p399_p4 = por %p398_p3, %p397_p2 }
  0x2f   :  { %p401_p6 = por %p400_p5, %p399_p4 }
  0x31   :  { %p402_p7 = pnand %p401_p6, %p395_p1 }
  0x33   :  { %405 = shalt.err (!%p402_p7)  }
  0x34   :  { %s406_s5 = scalar_lea.vmem %s652_s30, 16  ;;  %p411_p9 = scmp.lt.s32.totalorder %s652_s30, %s648_s27 }
  0x35   :  { %p407_p8 = scmp.ne.s32.totalorder %s652_s30, %s406_s5  ;;  %p412_p10 = scmp.lt.s32.totalorder %s674_s20, %s406_s5 }
  0x37   :  { %p413_p11 = por %p412_p10, %p411_p9 }
  0x39   :  { %p414_p12 = pnand %p413_p11, %p407_p8 }
  0x3b   :  { %417 = shalt.err (!%p414_p12)  }
  0x3c   :  { %56 = dma.hbm_to_vmem [thread:$0]  %s305_s25, 16, %s652_s30, [#allocation3 + $0x1] }
  0x3d   :  { %s308_s10 = scalar_lea.hbm %s307_s29, 256  ;;  %s330_s11 = sshll.u32 %s654_s0, 4 }
  0x3e   :  { %s443_s12 = scalar_lea.hbm %s307_s29, 272  ;;  %p422_p0 = scmp.lt.u32.totalorder %s308_s10, %s790_s1 }
  0x3f   :  { %p420_p13 = scmp.ne.s32.totalorder %s308_s10, %s443_s12  ;;  %p423_p1 = scmp.lt.u32.totalorder %s665_s16, %s443_s12 }
  0x40   :  { %p425_p3 = scmp.lt.u32.totalorder %s443_s12, %s308_s10 }
  0x41   :  { %p424_p2 = por %p423_p1, %p422_p0 }
  0x43   :  { %p426_p4 = por %p425_p3, %p424_p2 }
  0x45   :  { %p427_p5 = pnand %p426_p4, %p420_p13 }
  0x47   :  { %430 = shalt.err (!%p427_p5)  }
  0x48   :  { %s431_s30 = scalar_lea.vmem %s656_s7, 16  ;;  %p436_p7 = scmp.lt.s32.totalorder %s656_s7, %s648_s27 }
  0x49   :  { %p432_p6 = scmp.ne.s32.totalorder %s656_s7, %s431_s30  ;;  %p437_p8 = scmp.lt.s32.totalorder %s674_s20, %s431_s30 }
  0x4b   :  { %p438_p9 = por %p437_p8, %p436_p7 }
  0x4d   :  { %p439_p10 = pnand %p438_p9, %p432_p6 }
  0x4f   :  { %442 = shalt.err (!%p439_p10)  }
  0x50   :  { %73 = dma.hbm_to_vmem [thread:$0]  %s308_s10, 16, %s656_s7, [#allocation3 + $0x2] }
  0x51   :  { %s310_s17 = scalar_lea.hbm %s790_s1, %s330_s11  ;;  %s603_s19 = smov [#allocation2 + $0x3]  }
  0x52   :  { %s311_s18 = scalar_lea.hbm %s310_s17, 384  ;;  %s87_s21 = sshll.u32 %s603_s19, 4  ;;  %s88_s21 = int_to_ptr.vmem [resolvable:$true] %s87_s21 }
  0x53   :  { %s331_s22 = sld [smem:[#allocation4 + $0x4]]  ;;  %s468_s23 = scalar_lea.hbm %s310_s17, 400 }
  0x54   :  { %p445_p11 = scmp.ne.s32.totalorder %s311_s18, %s468_s23  ;;  %p447_p12 = scmp.lt.u32.totalorder %s311_s18, %s790_s1 }
  0x55   :  { %p448_p13 = scmp.lt.u32.totalorder %s665_s16, %s468_s23  ;;  %p450_p1 = scmp.lt.u32.totalorder %s468_s23, %s311_s18 }
  0x57   :  { %p449_p0 = por %p448_p13, %p447_p12 }
  0x59   :  { %p451_p2 = por %p450_p1, %p449_p0 }
  0x5b   :  { %p452_p3 = pnand %p451_p2, %p445_p11 }
  0x5d   :  { %455 = shalt.err (!%p452_p3)  }
  0x5e   :  { %s456_s7 = scalar_lea.vmem %s88_s21, 16  ;;  %p461_p5 = scmp.lt.s32.totalorder %s88_s21, %s648_s27 }
  0x5f   :  { %p457_p4 = scmp.ne.s32.totalorder %s88_s21, %s456_s7  ;;  %p462_p6 = scmp.lt.s32.totalorder %s674_s20, %s456_s7 }
  0x61   :  { %p463_p7 = por %p462_p6, %p461_p5 }
  0x63   :  { %p464_p8 = pnand %p463_p7, %p457_p4 }
  0x65   :  { %467 = shalt.err (!%p464_p8)  }
  0x66   :  { %90 = dma.hbm_to_vmem [thread:$0]  %s311_s18, 16, %s88_s21, [#allocation3 + $0x3] }
  0x67   :  { %s717_s26 = sld [smem:[#allocation4 + $0x5]]  ;;  %s604_s28 = smov [#allocation2 + $0x4]  }
  0x68   :  { %s104_s29 = sshll.u32 %s604_s28, 4  ;;  %s605_s6 = smov [#allocation2 + $0x5]   ;;  %s105_s29 = int_to_ptr.vmem [resolvable:$true] %s104_s29 }
  0x69   :  { %s121_s8 = sshll.u32 %s605_s6, 4  ;;  %s721_s9 = sld [smem:[#allocation4 + $0x6]]  ;;  %s719_s8 = int_to_ptr.vmem [resolvable:$true] %s121_s8 }
  0x6a   :  { %s332_s5 = sshll.u32 %s331_s22, 4  ;;  %s606_s13 = smov [#allocation2 + $0x6]  }
  0x6b   :  { %s313_s12 = scalar_lea.hbm %s790_s1, %s332_s5  ;;  %s138_s14 = sshll.u32 %s606_s13, 4  ;;  %s736_s14 = int_to_ptr.vmem [resolvable:$true] %s138_s14 }
  0x6c   :  { %s314_s30 = scalar_lea.hbm %s313_s12, 512  ;;  %s493_s15 = scalar_lea.hbm %s313_s12, 528 }
  0x6d   :  { %s334_s0 = sshll.u32 %s717_s26, 4  ;;  %p470_p9 = scmp.ne.s32.totalorder %s314_s30, %s493_s15 }
  0x6e   :  { %p472_p10 = scmp.lt.u32.totalorder %s314_s30, %s790_s1  ;;  %p473_p11 = scmp.lt.u32.totalorder %s665_s16, %s493_s15 }
  0x6f   :  { %p475_p13 = scmp.lt.u32.totalorder %s493_s15, %s314_s30 }
  0x70   :  { %p474_p12 = por %p473_p11, %p472_p10 }
  0x72   :  { %p476_p0 = por %p475_p13, %p474_p12 }
  0x74   :  { %p477_p1 = pnand %p476_p0, %p470_p9 }
  0x76   :  { %480 = shalt.err (!%p477_p1)  }
  0x77   :  { %s481_s19 = scalar_lea.vmem %s105_s29, 16  ;;  %p486_p3 = scmp.lt.s32.totalorder %s105_s29, %s648_s27 }
  0x78   :  { %p482_p2 = scmp.ne.s32.totalorder %s105_s29, %s481_s19  ;;  %p487_p4 = scmp.lt.s32.totalorder %s674_s20, %s481_s19 }
  0x7a   :  { %p488_p5 = por %p487_p4, %p486_p3 }
  0x7c   :  { %p489_p6 = pnand %p488_p5, %p482_p2 }
  0x7e   :  { %492 = shalt.err (!%p489_p6)  }
  0x7f   :  { %107 = dma.hbm_to_vmem [thread:$0]  %s314_s30, 16, %s105_s29, [#allocation3 + $0x4] }
  0x80   :  { %s316_s23 = scalar_lea.hbm %s790_s1, %s334_s0  ;;  %s336_s25 = sshll.u32 %s721_s9, 4 }
  0x81   :  { %s317_s24 = scalar_lea.hbm %s316_s23, 640  ;;  %s518_s7 = scalar_lea.hbm %s316_s23, 656 }
  0x82   :  { %p495_p7 = scmp.ne.s32.totalorder %s317_s24, %s518_s7  ;;  %p497_p8 = scmp.lt.u32.totalorder %s317_s24, %s790_s1 }
  0x83   :  { %p498_p9 = scmp.lt.u32.totalorder %s665_s16, %s518_s7  ;;  %p500_p11 = scmp.lt.u32.totalorder %s518_s7, %s317_s24 }
  0x85   :  { %p499_p10 = por %p498_p9, %p497_p8 }
  0x87   :  { %p501_p12 = por %p500_p11, %p499_p10 }
  0x89   :  { %p502_p13 = pnand %p501_p12, %p495_p7 }
  0x8b   :  { %505 = shalt.err (!%p502_p13)  }
  0x8c   :  { %s506_s29 = scalar_lea.vmem %s719_s8, 16  ;;  %p511_p1 = scmp.lt.s32.totalorder %s719_s8, %s648_s27 }
  0x8d   :  { %p507_p0 = scmp.ne.s32.totalorder %s719_s8, %s506_s29  ;;  %p512_p2 = scmp.lt.s32.totalorder %s674_s20, %s506_s29 }
  0x8f   :  { %p513_p3 = por %p512_p2, %p511_p1 }
  0x91   :  { %p514_p4 = pnand %p513_p3, %p507_p0 }
  0x93   :  { %517 = shalt.err (!%p514_p4)  }
  0x94   :  { %124 = dma.hbm_to_vmem [thread:$0]  %s317_s24, 16, %s719_s8, [#allocation3 + $0x5] }
  0x95   :  { %s319_s5 = scalar_lea.hbm %s790_s1, %s336_s25  ;;  %s337_s10 = sld [smem:[#allocation4 + $0x7]] }
  0x96   :  { %s320_s11 = scalar_lea.hbm %s319_s5, 768  ;;  %s543_s12 = scalar_lea.hbm %s319_s5, 784 }
  0x97   :  { %p520_p5 = scmp.ne.s32.totalorder %s320_s11, %s543_s12  ;;  %p522_p6 = scmp.lt.u32.totalorder %s320_s11, %s790_s1 }
  0x98   :  { %p523_p7 = scmp.lt.u32.totalorder %s665_s16, %s543_s12  ;;  %p525_p9 = scmp.lt.u32.totalorder %s543_s12, %s320_s11 }
  0x9a   :  { %p524_p8 = por %p523_p7, %p522_p6 }
  0x9c   :  { %p526_p10 = por %p525_p9, %p524_p8 }
  0x9e   :  { %p527_p11 = pnand %p526_p10, %p520_p5 }
  0xa0   :  { %530 = shalt.err (!%p527_p11)  }
  0xa1   :  { %s531_s8 = scalar_lea.vmem %s736_s14, 16  ;;  %p536_p13 = scmp.lt.s32.totalorder %s736_s14, %s648_s27 }
  0xa2   :  { %p532_p12 = scmp.ne.s32.totalorder %s736_s14, %s531_s8  ;;  %p537_p0 = scmp.lt.s32.totalorder %s674_s20, %s531_s8 }
  0xa4   :  { %p538_p1 = por %p537_p0, %p536_p13 }
  0xa6   :  { %p539_p2 = pnand %p538_p1, %p532_p12 }
  0xa8   :  { %542 = shalt.err (!%p539_p2)  }
  0xa9   :  { %141 = dma.hbm_to_vmem [thread:$0]  %s320_s11, 16, %s736_s14, [#allocation3 + $0x6] }
  0xaa   :  { %s607_s0 = smov [#allocation2 + $0x7]   ;;  %s338_s17 = sshll.u32 %s337_s10, 4 }
  0xab   :  { %s155_s15 = sshll.u32 %s607_s0, 4  ;;  %s322_s21 = scalar_lea.hbm %s790_s1, %s338_s17  ;;  %s156_s15 = int_to_ptr.vmem [resolvable:$true] %s155_s15 }
  0xac   :  { %s323_s22 = scalar_lea.hbm %s322_s21, 896  ;;  %s568_s23 = scalar_lea.hbm %s322_s21, 912 }
  0xad   :  { %p545_p3 = scmp.ne.s32.totalorder %s323_s22, %s568_s23  ;;  %p547_p4 = scmp.lt.u32.totalorder %s323_s22, %s790_s1 }
  0xae   :  { %p548_p5 = scmp.lt.u32.totalorder %s665_s16, %s568_s23  ;;  %p550_p7 = scmp.lt.u32.totalorder %s568_s23, %s323_s22 }
  0xb0   :  { %p549_p6 = por %p548_p5, %p547_p4 }
  0xb2   :  { %p551_p8 = por %p550_p7, %p549_p6 }
  0xb4   :  { %p552_p9 = pnand %p551_p8, %p545_p3 }
  0xb6   :  { %555 = shalt.err (!%p552_p9)  }
  0xb7   :  { %s556_s14 = scalar_lea.vmem %s156_s15, 16  ;;  %p561_p11 = scmp.lt.s32.totalorder %s156_s15, %s648_s27 }
  0xb8   :  { %p557_p10 = scmp.ne.s32.totalorder %s156_s15, %s556_s14  ;;  %p562_p12 = scmp.lt.s32.totalorder %s674_s20, %s556_s14 }
  0xba   :  { %p563_p13 = por %p562_p12, %p561_p11 }
  0xbc   :  { %p564_p0 = pnand %p563_p13, %p557_p10 }
  0xbe   :  { %567 = shalt.err (!%p564_p0)  }
  0xbf   :  { %158 = dma.hbm_to_vmem [thread:$0]  %s323_s22, 16, %s156_s15, [#allocation3 + $0x7] }
  0xc0   :  { %581 = dma.done.wait [#allocation3], 16 }
  0xc1   :  { %582 = vsyncadd [#allocation3], 4294967280 }
  0xc2   :  { %583 = dma.done.wait [#allocation3 + $0x1], 16 }
  0xc3   :  { %584 = vsyncadd [#allocation3 + $0x1], 4294967280 }
  0xc4   :  { %585 = dma.done.wait [#allocation3 + $0x2], 16 }
  0xc5   :  { %586 = vsyncadd [#allocation3 + $0x2], 4294967280 }
  0xc6   :  { %587 = dma.done.wait [#allocation3 + $0x3], 16 }
  0xc7   :  { %588 = vsyncadd [#allocation3 + $0x3], 4294967280 }
  0xc8   :  { %589 = dma.done.wait [#allocation3 + $0x4], 16 }
  0xc9   :  { %590 = vsyncadd [#allocation3 + $0x4], 4294967280 }
  0xca   :  { %591 = dma.done.wait [#allocation3 + $0x5], 16 }
  0xcb   :  { %592 = vsyncadd [#allocation3 + $0x5], 4294967280 }
  0xcc   :  { %593 = dma.done.wait [#allocation3 + $0x6], 16 }
  0xcd   :  { %594 = vsyncadd [#allocation3 + $0x6], 4294967280 }
  0xce   :  { %595 = dma.done.wait [#allocation3 + $0x7], 16 }
  0xcf   :  { %596 = vsyncadd [#allocation3 + $0x7], 4294967280  ;;  %v176_v0 = vld [vmem:[#allocation2] sm:$0xff]  ;;  %v339_v1 = vld [vmem:[%s791_s2] ss:$0 sm:$0xff]  ;;  %v194_v3 = vlaneseq  ;;  %vm188_vm0 = vcmask 7168  }
  0xd0   :  { %v184_v2 = vmul.f32 %v339_v1, %v176_v0  ;;  %vm212_vm2 = vcmask 6144   ;;  %s569_s28 = scalar_lea.hbm %s793_s4, 16 }
  0xd1   :  { %v195_v4 = vshrl.u32 %v194_v3, 7  ;;  %p570_p1 = scmp.ne.s32.totalorder %s793_s4, %s569_s28  ;;  %p573_p2 = scmp.lt.u32.totalorder %s569_s28, %s793_s4 }
  0xd2   :  { %185 = vadd.xlane.f32.xlu0 %v184_v2 }
  0xd3   :  { %v200_v7 = vand.u32 3, %v195_v4  ;;  %p575_p3 = pnand %p573_p2, %p570_p1 }
  0xd5   :  { %vm208_vm1 = vcmp.ne.s32.totalorder %v200_v7, 3 }
 0x15f   :  { %v186_v5 = vpop.xlane.xlu0 %185 }
 0x160   :  { %189 = vst.msk [vmem:[%s792_s3] sm:$0xff] %vm188_vm0, %v186_v5  ;;  %v191_v6 = vrot.slane %v186_v5, 1 }
 0x162   :  { %v193_v8 = vsub.f32 %v186_v5, %v191_v6 }
 0x164   :  { %v209_v9 = vsub.f32 1.0, %v193_v8 }
 0x166   :  { %v210_v10 = vmax.f32 %v209_v9, 0.0 }
 0x168   :  { %v211_v11 = vsel %vm208_vm1, %v210_v10, 0.0 }
 0x169   :  { %v213_v12 = vsel %vm212_vm2, %v211_v11, 0.0 }
 0x16a   :  { %214 = vadd.xlane.f32.xlu0 %v213_v12 }
 0x1f7   :  { %v215_v13 = vpop.xlane.xlu0 %214 }
 0x1f8   :  { %v216_v14 = vrot.slane %v215_v13, 4 }
 0x1fa   :  { %v217_v15 = vadd.f32 %v216_v14, %v215_v13 }
 0x1fc   :  { %v218_v16 = vrot.slane %v217_v15, 2 }
 0x1fe   :  { %v219_v17 = vadd.f32 %v218_v16, %v217_v15 }
 0x200   :  { %v220_v18 = vrot.slane %v219_v17, 1 }
 0x202   :  { %v221_v19 = vadd.f32 %v220_v18, %v219_v17 }
 0x204   :  { %348 = vpush %v221_v19 }
 0x235   :  { %s349_s2 = spop %348 }
 0x236   :  { %s225_s3 = smul.f32 0.5, %s349_s2 }
 0x238   :  { %227 = sst [smem:[#allocation7]] %s225_s3 }
 0x239   :  { %578 = shalt.err (!%p575_p3)
}
 0x23a   :  { %s608_s10 = smov [#allocation7]  }
 0x23b   :  { %237 = dma.smem_to_hbm %s608_s10, 16, %s793_s4, [#allocation6]  }
 0x23c   :  { %597 = dma.done.wait [#allocation6], 16  }
 0x23d   :  { %598 = vsyncadd [#allocation6], 4294967280 }
 0x23e   :  { %243 = sfence }
 0x23f   :  { %244 = vsyncpa [#allocation5], 1 }
 0x240   :  { %245 = vsyncpa [#allocation6], 1 }
 0x241   :  { %246 = vsyncmov [#allocation3] }
 0x244   :  { %s247_s13 = vpop.sfrf %246 }
 0x245   :  { %p340_p4 = scmp.ne.s32.totalorder %s247_s13, 0 }
 0x247   :  { %251 = shalt.err (%p340_p4)  }
 0x248   :  { %253 = vsyncmov [#allocation3 + $0x1] }
 0x24b   :  { %s254_s30 = vpop.sfrf %253 }
 0x24c   :  { %p341_p5 = scmp.ne.s32.totalorder %s254_s30, 0 }
 0x24e   :  { %258 = shalt.err (%p341_p5)  }
 0x24f   :  { %260 = vsyncmov [#allocation3 + $0x2] }
 0x252   :  { %s261_s8 = vpop.sfrf %260 }
 0x253   :  { %p342_p6 = scmp.ne.s32.totalorder %s261_s8, 0 }
 0x255   :  { %265 = shalt.err (%p342_p6)  }
 0x256   :  { %267 = vsyncmov [#allocation3 + $0x3] }
 0x259   :  { %s268_s0 = vpop.sfrf %267 }
 0x25a   :  { %p343_p7 = scmp.ne.s32.totalorder %s268_s0, 0 }
 0x25c   :  { %272 = shalt.err (%p343_p7)  }
 0x25d   :  { %274 = vsyncmov [#allocation3 + $0x4] }
 0x260   :  { %s275_s4 = vpop.sfrf %274 }
 0x261   :  { %p344_p8 = scmp.ne.s32.totalorder %s275_s4, 0 }
 0x263   :  { %279 = shalt.err (%p344_p8)  }
 0x264   :  { %281 = vsyncmov [#allocation3 + $0x5] }
 0x267   :  { %s282_s15 = vpop.sfrf %281 }
 0x268   :  { %p345_p9 = scmp.ne.s32.totalorder %s282_s15, 0 }
 0x26a   :  { %286 = shalt.err (%p345_p9)  }
 0x26b   :  { %288 = vsyncmov [#allocation3 + $0x6] }
 0x26e   :  { %s289_s17 = vpop.sfrf %288 }
 0x26f   :  { %p346_p10 = scmp.ne.s32.totalorder %s289_s17, 0 }
 0x271   :  { %293 = shalt.err (%p346_p10)  }
 0x272   :  { %295 = vsyncmov [#allocation3 + $0x7] }
 0x275   :  { %s296_s18 = vpop.sfrf %295 }
 0x276   :  { %p347_p11 = scmp.ne.s32.totalorder %s296_s18, 0 }
 0x278   :  { %300 = shalt.err (%p347_p11)  }

</bundles_post_ra>
